<compile_context>
chip_gen: v7x
topology: tpu7x:2x2x1
jax: 0.10.0
libtpu: 0.0.40
codegen_flags: <defaults>
</compile_context>

<pallas_src>
import jax
import jax.numpy as jnp
from jax.experimental import pallas as pl
from jax.experimental.pallas import tpu as pltpu  # noqa: F401  (TPU backend)

B = 2          # batch
C_IN = 32      # input_dim
C_OUT = 128    # output_dim
H = W = 4      # fixed spatial size (pool_size = 4*4 = 16)
P = H * W      # 16 spatial positions


def queryproj_kernel(x_ref, w_ref, b_ref, o_ref):
    # Single fused matmul: [B, P*C_in] @ [P*C_in, C_out] on the MXU (N=128
    # matches the 128-wide MXU tile), then bias + relu on the VPU.
    z = jnp.dot(x_ref[...], w_ref[...], preferred_element_type=jnp.float32)
    o_ref[...] = jnp.maximum(z + b_ref[...], 0.0)


def prepare_params(wc_torch, bc, wfc_torch, bfc):
    """One-time (model-load) fusion of conv weights into the FC weights.

    wc_torch : [C_out, C_in]        (PyTorch conv weight, 1x1 squeezed)
    bc       : [C_out]
    wfc_torch: [C_out, 16*C_out]    (PyTorch fc weight, flatten index c*16+p)
    bfc      : [C_out]
    Returns  : W_comb [P*C_in, C_out], b_comb [1, C_out]
    """
    wfc3 = wfc_torch.reshape(C_OUT, C_OUT, P)                      # [o, c, p]
    w_comb = jnp.einsum('ci,ocp->pio', wc_torch, wfc3,
                        preferred_element_type=jnp.float32)
    w_comb = w_comb.reshape(P * C_IN, C_OUT)                       # rows = p*C_in + i
    b_comb = bfc + jnp.einsum('c,ocp->o', bc, wfc3,
                              preferred_element_type=jnp.float32)
    return w_comb, b_comb.reshape(1, C_OUT)


@jax.jit
def query_proj(x_nchw, w_comb, b_comb):
    """x_nchw: [B, C_in, 4, 4] -> [B, 1, C_out] using pre-fused weights."""
    # channels-last flatten: x_flat[b, p*C_in + i]  (tiny, ~4 KiB)
    x_flat = jnp.transpose(x_nchw, (0, 2, 3, 1)).reshape(B, P * C_IN)

    out = pl.pallas_call(
        queryproj_kernel,
        out_shape=jax.ShapeDtypeStruct((B, C_OUT), jnp.float32),
        in_specs=[
            pl.BlockSpec((B, P * C_IN), lambda: (0, 0)),
            pl.BlockSpec((P * C_IN, C_OUT), lambda: (0, 0)),
            pl.BlockSpec((1, C_OUT), lambda: (0, 0)),
        ],
        out_specs=pl.BlockSpec((B, C_OUT), lambda: (0, 0)),
        cost_estimate=pl.CostEstimate(
            flops=2 * B * P * C_IN * C_OUT,
            transcendentals=0,
            bytes_accessed=4 * (B * P * C_IN + P * C_IN * C_OUT
                                + C_OUT + B * C_OUT),
        ),
    )(x_flat, w_comb, b_comb)

    return out[:, None, :]  # unsqueeze(1)


def torch_reference(x_nchw, wc_torch, bc, wfc_torch, bfc):
    """Pure-JAX emulation of the PyTorch forward (NCHW) for verification."""
    y = jnp.einsum('bihw,oi->bohw', x_nchw, wc_torch) + bc[None, :, None, None]
    v = y.reshape(B, -1)                       # PyTorch flatten(1): channel-major
    out = jnp.maximum(v @ wfc_torch.T + bfc, 0.0)
    return out[:, None, :]


if __name__ == "__main__":
    key = jax.random.PRNGKey(0)
    k_x, k_wc, k_bc, k_wf, k_bf = jax.random.split(key, 5)

    # deterministic synthetic parameters (PyTorch-layout shapes)
    x = jax.random.normal(k_x, (B, C_IN, H, W), dtype=jnp.float32)
    wc_torch = jax.random.normal(k_wc, (C_OUT, C_IN), dtype=jnp.float32) * 0.05
    bc = jax.random.normal(k_bc, (C_OUT,), dtype=jnp.float32) * 0.05
    wfc_torch = jax.random.normal(k_wf, (C_OUT, P * C_OUT), dtype=jnp.float32) * 0.02
    bfc = jax.random.normal(k_bf, (C_OUT,), dtype=jnp.float32) * 0.02

    # One-time weight fusion (hoisted out of the per-call hot path).
    w_comb, b_comb = prepare_params(wc_torch, bc, wfc_torch, bfc)
    w_comb = jax.block_until_ready(w_comb)

    out = query_proj(x, w_comb, b_comb)
    out = jax.block_until_ready(out)

    ref = torch_reference(x, wc_torch, bc, wfc_torch, bfc)
    assert out.shape == (B, 1, C_OUT), out.shape
    assert jnp.allclose(out, ref, atol=1e-4, rtol=1e-4), "mismatch vs reference"

    print("KERNEL_OK")
</pallas_src>

<mosaic_0001>
module attributes {stable_mosaic.version = 11 : i64} {
  func.func @queryproj_kernel(%arg0: memref<2x512xf32, #tpu.memory_space<vmem>>, %arg1: memref<512x128xf32, #tpu.memory_space<vmem>>, %arg2: memref<1x128xf32, #tpu.memory_space<vmem>>, %arg3: memref<2x128xf32, #tpu.memory_space<vmem>>) attributes {dimension_semantics = [], scalar_prefetch = 0 : i64, scratch_operands = 0 : i64, tpu.core_type = #tpu.core_type<tc>} {
    %c0 = arith.constant 0 : index
    %c0_0 = arith.constant 0 : index
    %0 = vector.load %arg0[%c0, %c0_0] : memref<2x512xf32, #tpu.memory_space<vmem>>, vector<2x512xf32>
    %c0_1 = arith.constant 0 : index
    %c0_2 = arith.constant 0 : index
    %1 = vector.load %arg1[%c0_1, %c0_2] : memref<512x128xf32, #tpu.memory_space<vmem>>, vector<512x128xf32>
    %cst = arith.constant dense<0.000000e+00> : vector<2x128xf32>
    %2 = tpu.matmul %0, %1, %cst {dimension_numbers = #tpu.dot_dimension_numbers<[1], [0], [0], [1], [0, 0, 1, 1], [], []>} : vector<2x512xf32>, vector<512x128xf32>, vector<2x128xf32> -> vector<2x128xf32>
    %c0_3 = arith.constant 0 : index
    %c0_4 = arith.constant 0 : index
    %3 = vector.load %arg2[%c0_3, %c0_4] : memref<1x128xf32, #tpu.memory_space<vmem>>, vector<1x128xf32>
    %4 = vector.broadcast %3 : vector<1x128xf32> to vector<2x128xf32>
    %5 = arith.addf %2, %4 : vector<2x128xf32>
    %cst_5 = arith.constant 0.000000e+00 : f32
    %6 = vector.broadcast %cst_5 : f32 to vector<2x128xf32>
    %7 = arith.maximumf %5, %6 : vector<2x128xf32>
    %c0_6 = arith.constant 0 : index
    %c0_7 = arith.constant 0 : index
    %8 = vector.load %arg3[%c0_6, %c0_7] : memref<2x128xf32, #tpu.memory_space<vmem>>, vector<2x128xf32>
    tpu.vector_store %arg3[%c0_6, %c0_7], %7 {strides = array<i32>} : memref<2x128xf32, #tpu.memory_space<vmem>>, vector<2x128xf32>,
    return
  }
}

</mosaic_0001>

<bundles_post_ra>
// kernel: query_proj.1
= control target key start
LH: loop header
LB: loop body
LE: loop exit
PB: predicated region body
PF: predicated region fallthrough
CT: control target
= control target key end

     0   :  { %8 = vsyncpa [#allocation3], 0  ;;  %s524_s0 = inlined_call_operand.vmem [shape: f32[2,512], index: 0, kind: input, shape index: {}]   ;;  %s525_s1 = inlined_call_operand.hbm [shape: f32[512,128], index: 1, kind: input, shape index: {}]   ;;  %s526_s2 = inlined_call_operand.vmem [shape: f32[1,128], index: 2, kind: input, shape index: {}]   ;;  %s527_s3 = inlined_call_operand.hbm [shape: f32[2,128], index: 3, kind: output, shape index: {}]  }
   0x1   :  { %9 = vsyncpa [#allocation4], 0  ;;  %s469_s12 = smov [#allocation2]   ;;  %s421_s16 = scalar_lea.hbm %s525_s1, 8192 }
   0x2   :  { %s17_s13 = sshll.u32 %s469_s12, 4  ;;  %p422_p0 = scmp.ne.s32.totalorder %s525_s1, %s421_s16  ;;  %s18_s13 = int_to_ptr.vmem [resolvable:$true] %s17_s13 }
   0x3   :  { %p425_p1 = scmp.lt.u32.totalorder %s421_s16, %s525_s1 }
   0x5   :  { %p427_p2 = pnand %p425_p1, %p422_p0 }
   0x7   :  { %430 = shalt.err (!%p427_p2)
}
   0x8   :  { %s431_s21 = scalar_lea.vmem %s18_s13, 8192  ;;  %p436_p4 = scmp.lt.s32.totalorder %s18_s13, %s18_s13 }
   0x9   :  { %p432_p3 = scmp.ne.s32.totalorder %s18_s13, %s431_s21  ;;  %p437_p5 = scmp.lt.s32.totalorder %s431_s21, %s431_s21 }
   0xb   :  { %p438_p6 = por %p437_p5, %p436_p4 }
   0xd   :  { %p439_p7 = pnand %p438_p6, %p432_p3 }
   0xf   :  { %442 = shalt.err (!%p439_p7)
}
  0x10   :  { %s470_s22 = smov 128   ;;  %s471_s23 = smov 8  }
  0x11   :  { %23 = dma.hbm_to_vmem [thread:$0]  %s525_s1, 8192, %s18_s13, [#allocation3], %s470_s22, %s470_s22, %s471_s23  }
  0x12   :  { %465 = dma.done.wait [#allocation3], 8192  }
  0x13   :  { %466 = vsyncadd [#allocation3], 4294959104  ;;  %v46_v0 = vld [vmem:[#allocation2 + $0x80] sm:$0xff]  ;;  %v47_v1 = vld [vmem:[#allocation2 + $0x88] sm:$0xff]  ;;  %v472_v47 = vmov 1983009808   ;;  %v106_v49 = vlaneseq }
  0x14   :  { %v30_v2 = vld [vmem:[#allocation2] sm:$0xff]  ;;  %v351_v3 = vpack.c.bf16 %v47_v1, %v46_v0  ;;  %v31_v4 = vld [vmem:[#allocation2 + $0x8] sm:$0xff]  ;;  %v48_v11 = vld [vmem:[#allocation2 + $0x90] sm:$0xff]  ;;  %v104_v48 = vunpack.c.l.s4 %v472_v47  ;;  %s473_s28 = smov [#allocation5]  }
  0x15   :  { %v78_v5 = vld [vmem:[#allocation2 + $0x180] sm:$0xff]  ;;  %v79_v6 = vld [vmem:[#allocation2 + $0x188] sm:$0xff]  ;;  %v353_v7 = vpack.c.bf16 %v31_v4, %v30_v2  ;;  %v49_v13 = vld [vmem:[#allocation2 + $0x98] sm:$0xff]  ;;  %v107_v0 = vshrl.u32 %v106_v49, 7  ;;  %s271_s29 = sshll.u32 %s473_s28, 4  ;;  %s272_s29 = int_to_ptr.vmem [resolvable:$true] %s271_s29 }
  0x16   :  { %v383_v8 = vpack.c.bf16 %v79_v6, %v78_v5  ;;  %v62_v9 = vld [vmem:[#allocation2 + $0x100] sm:$0xff]  ;;  %v63_v10 = vld [vmem:[#allocation2 + $0x108] sm:$0xff]  ;;  %352 = vmatprep.subr.bf16.mxu0 %v351_v3  ;;  %v32_v14 = vld [vmem:[#allocation2 + $0x10] sm:$0xff]  ;;  %v355_v16 = vpack.c.bf16 %v49_v13, %v48_v11  ;;  %v105_v63 = vunpack.c.0.s8 %v104_v48  ;;  %s443_s30 = scalar_lea.vmem %s272_s29, 32  ;;  %p448_p9 = scmp.lt.s32.totalorder %s272_s29, %s272_s29 }
  0x17   :  { %v385_v12 = vpack.c.bf16 %v63_v10, %v62_v9  ;;  %v33_v15 = vld [vmem:[#allocation2 + $0x18] sm:$0xff]  ;;  %354 = vmatpush3.bf16.msra.mxu0 %v353_v7  ;;  %v80_v18 = vld [vmem:[#allocation2 + $0x190] sm:$0xff]  ;;  %v50_v23 = vld [vmem:[#allocation2 + $0xa0] sm:$0xff]  ;;  %p444_p8 = scmp.ne.s32.totalorder %s272_s29, %s443_s30  ;;  %p449_p10 = scmp.lt.s32.totalorder %s443_s30, %s443_s30 }
  0x18   :  { %384 = vmatprep.subr.bf16.mxu1 %v383_v8  ;;  %v357_v17 = vpack.c.bf16 %v33_v15, %v32_v14  ;;  %v81_v19 = vld [vmem:[#allocation2 + $0x198] sm:$0xff]  ;;  %v64_v20 = vld [vmem:[#allocation2 + $0x110] sm:$0xff]  ;;  %v51_v24 = vld [vmem:[#allocation2 + $0xa8] sm:$0xff]  ;;  %356 = vmatprep.subr.bf16.mxu0 %v355_v16  ;;  %v108_v13 = vsub.s32 %v105_v63, %v107_v0 }
  0x19   :  { %386 = vmatpush3.bf16.msra.mxu1 %v385_v12  ;;  %v387_v21 = vpack.c.bf16 %v81_v19, %v80_v18  ;;  %v65_v22 = vld [vmem:[#allocation2 + $0x118] sm:$0xff]  ;;  %v359_v26 = vpack.c.bf16 %v51_v24, %v50_v23  ;;  %v34_v27 = vld [vmem:[#allocation2 + $0x20] sm:$0xff]  ;;  %v35_v28 = vld [vmem:[#allocation2 + $0x28] sm:$0xff]  ;;  %p450_p11 = por %p449_p10, %p448_p9 }
  0x1a   :  { %v389_v25 = vpack.c.bf16 %v65_v22, %v64_v20  ;;  %v82_v29 = vld [vmem:[#allocation2 + $0x1a0] sm:$0xff]  ;;  %v83_v30 = vld [vmem:[#allocation2 + $0x1a8] sm:$0xff]  ;;  %v361_v33 = vpack.c.bf16 %v35_v28, %v34_v27  ;;  %v52_v35 = vld [vmem:[#allocation2 + $0xb0] sm:$0xff] }
  0x1b   :  { %388 = vmatprep.subr.bf16.mxu1 %v387_v21  ;;  %v66_v31 = vld [vmem:[#allocation2 + $0x120] sm:$0xff]  ;;  %v67_v32 = vld [vmem:[#allocation2 + $0x128] sm:$0xff]  ;;  %358 = vmatpush3.bf16.msra.mxu0 %v357_v17  ;;  %v391_v34 = vpack.c.bf16 %v83_v30, %v82_v29  ;;  %v53_v36 = vld [vmem:[#allocation2 + $0xb8] sm:$0xff]  ;;  %p451_p12 = pnand %p450_p11, %p444_p8 }
  0x1c   :  { %v36_v37 = vld [vmem:[#allocation2 + $0x30] sm:$0xff]  ;;  %360 = vmatprep.subr.bf16.mxu0 %v359_v26  ;;  %v393_v38 = vpack.c.bf16 %v67_v32, %v66_v31  ;;  %v363_v39 = vpack.c.bf16 %v53_v36, %v52_v35  ;;  %v37_v40 = vld [vmem:[#allocation2 + $0x38] sm:$0xff]  ;;  %v54_v46 = vld [vmem:[#allocation2 + $0xc0] sm:$0xff] }
  0x1d   :  { %390 = vmatpush3.bf16.msra.mxu1 %v389_v25  ;;  %v84_v41 = vld [vmem:[#allocation2 + $0x1b0] sm:$0xff]  ;;  %v85_v42 = vld [vmem:[#allocation2 + $0x1b8] sm:$0xff]  ;;  %v55_v50 = vld [vmem:[#allocation2 + $0xc8] sm:$0xff]  ;;  %v365_v51 = vpack.c.bf16 %v37_v40, %v36_v37 }
  0x1e   :  { %392 = vmatprep.subr.bf16.mxu1 %v391_v34  ;;  %v395_v43 = vpack.c.bf16 %v85_v42, %v84_v41  ;;  %v68_v44 = vld [vmem:[#allocation2 + $0x130] sm:$0xff]  ;;  %v69_v45 = vld [vmem:[#allocation2 + $0x138] sm:$0xff]  ;;  %v86_v52 = vld [vmem:[#allocation2 + $0x1c0] sm:$0xff]  ;;  %v367_v55 = vpack.c.bf16 %v55_v50, %v54_v46 }
  0x1f   :  { %362 = vmatpush3.bf16.msra.mxu0 %v361_v33  ;;  %v87_v53 = vld [vmem:[#allocation2 + $0x1c8] sm:$0xff]  ;;  %v397_v54 = vpack.c.bf16 %v69_v45, %v68_v44  ;;  %v38_v56 = vld [vmem:[#allocation2 + $0x40] sm:$0xff]  ;;  %v56_v61 = vld [vmem:[#allocation2 + $0xd0] sm:$0xff] }
  0x20   :  { %364 = vmatprep.subr.bf16.mxu0 %v363_v39  ;;  %v39_v57 = vld [vmem:[#allocation2 + $0x48] sm:$0xff]  ;;  %v70_v58 = vld [vmem:[#allocation2 + $0x140] sm:$0xff]  ;;  %v399_v59 = vpack.c.bf16 %v87_v53, %v86_v52  ;;  %v57_v62 = vld [vmem:[#allocation2 + $0xd8] sm:$0xff] }
  0x21   :  { %394 = vmatpush3.bf16.msra.mxu1 %v393_v38  ;;  %v71_v60 = vld [vmem:[#allocation2 + $0x148] sm:$0xff]  ;;  %v88_v1 = vld [vmem:[#allocation2 + $0x1d0] sm:$0xff]  ;;  %v89_v2 = vld [vmem:[#allocation2 + $0x1d8] sm:$0xff]  ;;  %v369_v3 = vpack.c.bf16 %v39_v57, %v38_v56  ;;  %v371_v5 = vpack.c.bf16 %v57_v62, %v56_v61 }
  0x22   :  { %396 = vmatprep.subr.bf16.mxu1 %v395_v43  ;;  %v401_v4 = vpack.c.bf16 %v71_v60, %v70_v58  ;;  %v40_v6 = vld [vmem:[#allocation2 + $0x50] sm:$0xff]  ;;  %v41_v7 = vld [vmem:[#allocation2 + $0x58] sm:$0xff]  ;;  %v403_v9 = vpack.c.bf16 %v89_v2, %v88_v1  ;;  %v58_v11 = vld [vmem:[#allocation2 + $0xe0] sm:$0xff] }
  0x23   :  { %366 = vmatpush3.bf16.msra.mxu0 %v365_v51  ;;  %v72_v8 = vld [vmem:[#allocation2 + $0x150] sm:$0xff]  ;;  %v73_v10 = vld [vmem:[#allocation2 + $0x158] sm:$0xff]  ;;  %v59_v12 = vld [vmem:[#allocation2 + $0xe8] sm:$0xff]  ;;  %v373_v16 = vpack.c.bf16 %v41_v7, %v40_v6 }
  0x24   :  { %368 = vmatprep.subr.bf16.mxu0 %v367_v55  ;;  %v90_v14 = vld [vmem:[#allocation2 + $0x1e0] sm:$0xff]  ;;  %v91_v15 = vld [vmem:[#allocation2 + $0x1e8] sm:$0xff]  ;;  %v405_v18 = vpack.c.bf16 %v73_v10, %v72_v8  ;;  %v375_v19 = vpack.c.bf16 %v59_v12, %v58_v11  ;;  %v60_v25 = vld [vmem:[#allocation2 + $0xf0] sm:$0xff] }
  0x25   :  { %398 = vmatpush3.bf16.msra.mxu1 %v397_v54  ;;  %v42_v17 = vld [vmem:[#allocation2 + $0x60] sm:$0xff]  ;;  %v43_v20 = vld [vmem:[#allocation2 + $0x68] sm:$0xff]  ;;  %v407_v23 = vpack.c.bf16 %v91_v15, %v90_v14  ;;  %v61_v26 = vld [vmem:[#allocation2 + $0xf8] sm:$0xff] }
  0x26   :  { %400 = vmatprep.subr.bf16.mxu1 %v399_v59  ;;  %v74_v21 = vld [vmem:[#allocation2 + $0x160] sm:$0xff]  ;;  %v75_v24 = vld [vmem:[#allocation2 + $0x168] sm:$0xff]  ;;  %v92_v29 = vld [vmem:[#allocation2 + $0x1f0] sm:$0xff]  ;;  %v377_v31 = vpack.c.bf16 %v43_v20, %v42_v17  ;;  %v379_v35 = vpack.c.bf16 %v61_v26, %v60_v25 }
  0x27   :  { %370 = vmatpush3.bf16.msra.mxu0 %v369_v3  ;;  %v29_v22 = vld [vmem:[%s524_s0] sm:$0xff]  ;;  %v93_v30 = vld [vmem:[#allocation2 + $0x1f8] sm:$0xff]  ;;  %v409_v34 = vpack.c.bf16 %v75_v24, %v74_v21  ;;  %v44_v36 = vld [vmem:[#allocation2 + $0x70] sm:$0xff] }
  0x28   :  { %372 = vmatprep.subr.bf16.mxu0 %v371_v5  ;;  %v109_v27 = vrot.slane %v29_v22, %v108_v13  ;;  %v102_v28 = vcombine.high %v29_v22, %v29_v22  ;;  %v45_v37 = vld [vmem:[#allocation2 + $0x78] sm:$0xff]  ;;  %v411_v38 = vpack.c.bf16 %v93_v30, %v92_v29  ;;  %v76_v39 = vld [vmem:[#allocation2 + $0x170] sm:$0xff]  ;;  %v280_v45 = vld [vmem:[%s526_s2] ss:$0 sm:$0xff] }
  0x29   :  { %402 = vmatpush3.bf16.msra.mxu1 %v401_v4  ;;  %v77_v40 = vld [vmem:[#allocation2 + $0x178] sm:$0xff]  ;;  %v381_v42 = vpack.c.bf16 %v45_v37, %v44_v36 }
  0x2a   :  { %404 = vmatprep.subr.bf16.mxu1 %v403_v9  ;;  %v117_v32 = vcombine.high %v109_v27, %v109_v27  ;;  %v116_v33 = vrot.slane %v102_v28, %v108_v13  ;;  %v413_v43 = vpack.c.bf16 %v77_v40, %v76_v39 }
  0x2b   :  { %374 = vmatpush3.bf16.msra.mxu0 %v373_v16 }
  0x2c   :  { %376 = vmatprep.subr.bf16.mxu0 %v375_v19  ;;  %187 = vmatprep.mubr.f32.mxu0 %v117_v32  ;;  %v118_v41 = vcombine.high %v116_v33, %v116_v33 }
  0x2d   :  { %406 = vmatpush3.bf16.msra.mxu1 %v405_v18 }
  0x2e   :  { %408 = vmatprep.subr.bf16.mxu1 %v407_v23  ;;  %257 = vmatprep.mubr.f32.mxu1 %v118_v41 }
  0x2f   :  { %378 = vmatpush3.bf16.msra.mxu0 %v377_v31 }
  0x30   :  { %380 = vmatprep.subr.bf16.mxu0 %v379_v35 }
  0x31   :  { %410 = vmatpush3.bf16.msra.mxu1 %v409_v34 }
  0x32   :  { %412 = vmatprep.subr.bf16.mxu1 %v411_v38 }
  0x33   :  { %382 = vmatpush3.bf16.msra.mxu0 %v381_v42 }
  0x35   :  { %414 = vmatpush3.bf16.msra.mxu1 %v413_v43 }
  0x36   :  { %188 = vmatmul.mubr.f32.vlgmr.msra.gmra.mrb[0].mxu0 %v109_v27 }
  0x38   :  { %258 = vmatmul.mubr.f32.vlgmr.msra.gmra.mrb[0].mxu1 %v116_v33 }
 0x109   :  { %v313_v44 = vpop.f32.mrb[0].mxu0 }
 0x10a   :  { %v314_v46 = vpop.f32.mrb[1].mxu0 }
 0x10b   :  { %v348_v47 = vpop.f32.mrb[0].mxu1  ;;  %v315_v48 = vadd.f32 %v314_v46, %v313_v44 }
 0x10c   :  { %v349_v49 = vpop.f32.mrb[1].mxu1 }
 0x10d   :  { %v350_v50 = vadd.f32 %v349_v49, %v348_v47  ;;  %v190_v51 = vadd.f32 %v315_v48, %v280_v45 }
 0x10f   :  { %v260_v52 = vadd.f32 %v350_v50, %v190_v51 }
 0x111   :  { %v263_v53 = vmax.f32 %v260_v52, 0.0 }
 0x113   :  { %264 = vst [vmem:[#allocation5] sm:$0x3] %v263_v53 }
 0x114   :  { %454 = shalt.err (!%p451_p12)
}
 0x115   :  { %s455_s5 = scalar_lea.hbm %s527_s3, 32 }
 0x116   :  { %p456_p13 = scmp.ne.s32.totalorder %s527_s3, %s455_s5  ;;  %p459_p0 = scmp.lt.u32.totalorder %s455_s5, %s527_s3 }
 0x118   :  { %p461_p1 = pnand %p459_p0, %p456_p13 }
 0x11a   :  { %464 = shalt.err (!%p461_p1)
}
 0x11b   :  { %274 = dma.vmem_to_hbm [thread:$0]  %s272_s29, 32, %s527_s3, [#allocation4]  }
 0x11c   :  { %467 = dma.done.wait [#allocation4], 32  }
 0x11d   :  { %468 = vsyncadd [#allocation4], 4294967264 }
 0x11e   :  { %278 = vsyncpa [#allocation3], 1 }
 0x11f   :  { %279 = vsyncpa [#allocation4], 1 }

</bundles_post_ra>
